<compile_context>
chip_gen: v7x
topology: tpu7x:2x2x1
jax: 0.10.0
libtpu: 0.0.40
codegen_flags: <defaults>
</compile_context>

<pallas_src>
import functools

import jax
import jax.numpy as jnp
from jax.experimental import pallas as pl
from jax.experimental.pallas import tpu as pltpu


def _round_up(x, m):
    return ((x + m - 1) // m) * m


def _tile_plan(num_nodes, emb_dim, dtype, tile_n=None):
    """Pick (tile_rows, chunk_rows) for the node axis."""
    itemsize = jnp.dtype(dtype).itemsize
    # Dtype-aware sublane granule: 8 rows for 4-byte, 16 for 2-byte, 32 for 1-byte.
    granule = max(8, 32 // itemsize)
    bytes_per_row = emb_dim * itemsize

    # Double-buffered output-tile budget: 8 MiB total (4 MiB per buffer).  Fits
    # the default scoped VMEM on v5e/v6e/v7x, and 4 MiB tiles are already past
    # the point of diminishing returns for an HBM-write-bound broadcast.
    budget_rows = (8 * 1024 * 1024) // (2 * bytes_per_row)
    budget_rows = max(granule, (budget_rows // granule) * granule)

    rows_needed = _round_up(num_nodes, granule)
    tile = min(budget_rows, rows_needed)
    if tile_n is not None:
        tile = min(tile, _round_up(tile_n, granule))
    tile = max(granule, (tile // granule) * granule)

    # In-kernel fill chunk: ~64 KiB (16 vregs for f32) per store statement so the
    # broadcast value never approaches the 64-vreg register file (no spills).
    chunk = max(granule, (((64 * 1024) // bytes_per_row) // granule) * granule)
    chunk = min(chunk, tile)
    # Keep the tile an exact multiple of the chunk so the fill loop is exact.
    tile = max(chunk, (tile // chunk) * chunk)
    return tile, chunk


def _make_broadcast_kernel(tile, chunk, emb_dim):
    """Kernel: fill the (tile, emb_dim) output tile with the single table row."""
    n_chunks = tile // chunk

    def kernel(table_ref, out_ref):
        row = table_ref[...]                                       # (1, D)
        # Build one small (chunk, D) slab once per grid step (<= ~16 vregs),
        # then stream it into the tile with static, sublane-aligned stores.
        block = jnp.broadcast_to(row, (chunk, emb_dim)).astype(out_ref.dtype)
        for c in range(n_chunks):                                  # static unroll
            out_ref[pl.ds(c * chunk, chunk), :] = block

    return kernel


@functools.partial(jax.jit, static_argnames=("num_nodes", "tile_n"))
def dummy_node_encode(emb_table, *, num_nodes, tile_n=None):
    """emb_table: (1, emb_dim). Returns (num_nodes, emb_dim) where every row is
    emb_table[0] (embedding lookup with all-zero indices)."""
    num_emb, emb_dim = emb_table.shape
    assert num_emb == 1, "DummyNodeEncoder uses a single-row embedding table"
    dtype = emb_table.dtype
    itemsize = jnp.dtype(dtype).itemsize

    tile, chunk = _tile_plan(num_nodes, emb_dim, dtype, tile_n)
    grid = (pl.cdiv(num_nodes, tile),)

    # Note: the output block keeps the full emb_dim as the last (lane) dim, so
    # stores are unmasked vst whenever emb_dim is a multiple of 128.
    out = pl.pallas_call(
        _make_broadcast_kernel(tile, chunk, emb_dim),
        out_shape=jax.ShapeDtypeStruct((num_nodes, emb_dim), dtype),
        grid=grid,
        in_specs=[
            # Full 1-row table; same block index every step -> fetched once.
            pl.BlockSpec((1, emb_dim), lambda i: (0, 0)),
        ],
        out_specs=pl.BlockSpec((tile, emb_dim), lambda i: (i, 0)),
        compiler_params=pltpu.CompilerParams(
            dimension_semantics=("parallel",)),
        cost_estimate=pl.CostEstimate(
            flops=0,
            transcendentals=0,
            bytes_accessed=num_nodes * emb_dim * itemsize + emb_dim * itemsize),
    )(emb_table)
    return out


class DummyNodeEncoderPallas:
    """Mirrors torch.nn.Embedding(num_embeddings=1, embedding_dim=emb_dim)."""

    def __init__(self, emb_dim, key):
        # torch.nn.Embedding default init: weight ~ N(0, 1)
        self.weight = jax.random.normal(key, (1, emb_dim), dtype=jnp.float32)

    def __call__(self, edge_index_dtype, num_nodes):
        # dummy_attr = batch.edge_index.new_zeros((batch.num_nodes,)) is all
        # zeros, so the lookup reduces to broadcasting row 0; the index array
        # is never materialized (no HBM traffic for it).
        del edge_index_dtype
        return dummy_node_encode(self.weight, num_nodes=num_nodes)


if __name__ == "__main__":
    key = jax.random.PRNGKey(0)
    emb_dim = 128
    num_nodes = 333   # not a multiple of the tile: exercises the ragged last block

    enc = DummyNodeEncoderPallas(emb_dim, key)
    # edge_index in PyG is int64; dtype is irrelevant here because the indices
    # are all zero and never materialized.
    x = enc(jnp.int32, num_nodes)
    x = jax.block_until_ready(x)

    ref = jnp.broadcast_to(enc.weight[0], (num_nodes, emb_dim))
    assert x.shape == (num_nodes, emb_dim)
    assert x.dtype == jnp.float32
    assert bool(jnp.allclose(x, ref, atol=1e-6))

    # bf16 table: exercises the dtype-aware sublane granule (16 rows for 2-byte).
    w16 = jax.random.normal(jax.random.PRNGKey(1), (1, 256), dtype=jnp.bfloat16)
    y = jax.block_until_ready(dummy_node_encode(w16, num_nodes=40))
    assert y.shape == (40, 256) and y.dtype == jnp.bfloat16
    assert bool(jnp.all(y == jnp.broadcast_to(w16[0], (40, 256))))

    print("KERNEL_OK")
</pallas_src>

<mosaic_0001>
module attributes {stable_mosaic.version = 11 : i64} {
  func.func @kernel(%arg0: i32, %arg1: memref<1x128xf32, #tpu.memory_space<vmem>>, %arg2: memref<256x128xf32, #tpu.memory_space<vmem>>) attributes {dimension_semantics = [#tpu.dimension_semantics<parallel>], iteration_bounds = array<i64: 2>, scalar_prefetch = 0 : i64, scratch_operands = 0 : i64, tpu.core_type = #tpu.core_type<tc>, window_params = [{pipeline_mode = #tpu.pipeline_mode<synchronous>, transform_indices = @transform_0, window_bounds = array<i64: 1, 128>}, {transform_indices = @transform_1, window_bounds = array<i64: 256, 128>}]} {
    %c0 = arith.constant 0 : index
    %c0_0 = arith.constant 0 : index
    %0 = vector.load %arg1[%c0, %c0_0] : memref<1x128xf32, #tpu.memory_space<vmem>>, vector<1x128xf32>
    %1 = vector.shape_cast %0 : vector<1x128xf32> to vector<1x128xf32>
    %2 = vector.broadcast %1 : vector<1x128xf32> to vector<128x128xf32>
    %c0_1 = arith.constant 0 : index
    %c0_2 = arith.constant 0 : index
    %3 = vector.load %arg2[%c0_1, %c0_2] : memref<256x128xf32, #tpu.memory_space<vmem>>, vector<128x128xf32>
    tpu.vector_store %arg2[%c0_1, %c0_2], %2 {strides = array<i32>} : memref<256x128xf32, #tpu.memory_space<vmem>>, vector<128x128xf32>,
    %c128 = arith.constant 128 : index
    %c0_3 = arith.constant 0 : index
    %4 = vector.load %arg2[%c128, %c0_3] : memref<256x128xf32, #tpu.memory_space<vmem>>, vector<128x128xf32>
    tpu.vector_store %arg2[%c128, %c0_3], %2 {strides = array<i32>} : memref<256x128xf32, #tpu.memory_space<vmem>>, vector<128x128xf32>,
    return
  }
  func.func @transform_0(%arg0: i32) -> (i32, i32) {
    %c0_i32 = arith.constant 0 : i32
    %c0_i32_0 = arith.constant 0 : i32
    %c0_i32_1 = arith.constant 0 : i32
    return %c0_i32, %c0_i32_0 : i32, i32
  }
  func.func @transform_1(%arg0: i32) -> (i32, i32) {
    %c0_i32 = arith.constant 0 : i32
    %c0_i32_0 = arith.constant 0 : i32
    return %arg0, %c0_i32 : i32, i32
  }
}

</mosaic_0001>

<bundles_post_ra>
// kernel: dummy_node_encode.1
= control target key start
LH: loop header
LB: loop body
LE: loop exit
PB: predicated region body
PF: predicated region fallthrough
CT: control target
= control target key end

     0   :  { %6 = vsyncpa [#allocation3], 0  ;;  %s595_s0 = inlined_call_operand.hbm [shape: f32[1,128], index: 0, kind: input, shape index: {}]   ;;  %s596_s1 = inlined_call_operand.hbm [shape: f32[333,128], index: 1, kind: output, shape index: {}]  }
   0x1   :  { %7 = vsyncpa [#allocation4], 0 }
   0x2   :  { %9 = vsyncpa [#allocation4 + $0x1], 0  ;;  %s412_s6 = smov 0   ;;  %s414_s7 = smov 0  }
   0x3   :  { %s416_s8 = smov 0   ;;  %s418_s9 = smov 0  }
   0x4 LB: > { %s433_s10 = sadd.s32 4294967295, %s396_s9   ;;  %s234_s11 = sadd.s32 4294967294, %s396_s9   ;;  %s396_s9 = sphi %s418_s9, %s611_s9   ;;  %s392_s8 = sphi %s416_s8, %s610_s8   ;;  %s388_s7 = sphi %s414_s7, %s609_s7   ;;  %s384_s6 = sphi %s412_s6, %s608_s6  }
   0x5   : > { %s437_s12 = sadd.s32 1, %s396_s9   ;;  %s43_s13 = sadd.s32 1, %s392_s8 }
   0x6   : > { %s40_s14 = ssub.s32 %s396_s9, %s437_s12  ;;  %p53_p0 = scmp.ne.s32.totalorder %s392_s8, %s388_s7 }
   0x7   : > { %p41_p1 = scmp.eq.s32.totalorder %s40_s14, 0  ;;  %p54_p2 = scmp.eq.s32.totalorder %s433_s10, 1 }
   0x8   : > { %p59_p3 = scmp.ne.s32.totalorder %s388_s7, %s384_s6  ;;  %p60_p4 = scmp.eq.s32.totalorder %s234_s11, 1 }
   0x9   : > { %s448_s15 = scalar_select %p41_p1, %s392_s8, %s43_s13  }
   0xa   : > { %p450_p5 = por %p54_p2, %p53_p0  ;;  %p454_p6 = por %p60_p4, %p59_p3 }
   0xb   : > { %p235_p7 = scmp.ge.s32.totalorder %s396_s9, 1  ;;  %p67_p8 = scmp.lt.s32.totalorder %s396_s9, 3 }
   0xc   : > { %s599_s16 = scalar_select %p450_p5, 1, 0 }
   0xd   : > { %s600_s17 = scalar_select %p454_p6, 1, 0 }
   0xe   : > { %p597_p9 = scmp.eq.s32.totalorder %s433_s10, 0  ;;  %p461_p10 = pnand %p235_p7, %p67_p8 }
   0xf   : > { %s398_s19 = smov [#allocation2]   ;;  %s302_s24 = scalar_lea.hbm %s595_s0, 16 }
  0x10   : > { %s601_s18 = scalar_select %p461_p10, 1, 0 }
  0x11   : > { %s80_s20 = sshll.u32 %s398_s19, 4  ;;  %p256_p11 = pneg %p461_p10  ;;  %s81_s20 = int_to_ptr.vmem [resolvable:$true] %s80_s20 }
  0x12   : > { %p303_p13 = scmp.ne.s32.totalorder %s595_s0, %s302_s24  ;;  %p309_p3 = scmp.lt.u32.totalorder %s302_s24, %s595_s0 }
  0x13   : > { %p469_p12 = pnand %p597_p9, %p256_p11 }
  0x15   : > { %p304_p0 = pneg %p469_p12 }
  0x17   : > { %p305_p1 = pnand %p304_p0, %p303_p13 }
  0x19   : > { %p306_p2 = pneg %p305_p1 }
  0x1b   : > { %p311_p4 = pnand %p309_p3, %p306_p2 }
  0x1d   : > { %314 = shalt.err (!%p311_p4)
}
  0x1e   : > { %s315_s29 = scalar_lea.vmem %s81_s20, 16  ;;  %s322_s30 = scalar_lea.vmem %s81_s20, 32 }
  0x1f   : > { %p316_p7 = scmp.ne.s32.totalorder %s81_s20, %s315_s29  ;;  %p323_p9 = scmp.lt.s32.totalorder %s81_s20, %s81_s20 }
  0x20   : > { %p324_p6 = scmp.lt.s32.totalorder %s322_s30, %s315_s29 }
  0x21   : > { %p318_p8 = pnand %p316_p7, %p304_p0 }
  0x22   : > { %p325_p5 = por %p324_p6, %p323_p9 }
  0x23   : > { %p319_p11 = pneg %p318_p8 }
  0x25   : > { %p326_p10 = pnand %p325_p5, %p319_p11 }
  0x27   : > { %329 = shalt.err (!%p326_p10)
}
  0x28   : > { %259 = dma.hbm_to_vmem [thread:$0]  (!%p469_p12), %s595_s0, 16, %s81_s20, [#allocation3]  }
  0x29   : > { %p603_p13 = scmp.ne.s32.totalorder %s601_s18, 0 }
  0x2a   : > { %p604_p1 = scmp.eq.s32.totalorder (!%p603_p13), %s433_s10, 0 }
  0x2b   : > { %93 = sbr.rel (%p603_p13) target bundleno = 98 (0x62), region = 24 }
  0x32   : > { %375 = dma.done.wait (%p604_p1), [#allocation3], 16   ;;  %p605_p0 = pmov %p604_p1 }
  0x33   : > { %s105_s4 = sand.u32 1, %s388_s7   ;;  %v240_v0 = vld [vmem:[#allocation2] ss:$0 sm:$0xff]  ;;  %p606_p5 = scmp.ne.s32.totalorder %s599_s16, 0 }
  0x34   : > { %377 = vsyncadd (%p605_p0), [#allocation3], 4294967280  ;;  %s239_s5 = sshll.u32 %s105_s4, 8  ;;  %s534_s13 = scalar_lea.sflag [#allocation4], %s105_s4 }
  0x35   : > { %s498_s11 = scalar_lea.vmem [#allocation5], %s239_s5  ;;  %s242_s14 = sshll.u32 (%p606_p5), %s433_s10, 5 }
  0x36   : > { %120 = vst [vmem:[%s498_s11] sm:$0xff] %v240_v0  ;;  %121 = vst [vmem:[%s498_s11 + $0x8] sm:$0xff] %v240_v0  ;;  %s161_s18 = ssub.s32 (%p606_p5), 42, %s242_s14 }
  0x37   : > { %122 = vst [vmem:[%s498_s11 + $0x10] sm:$0xff] %v240_v0  ;;  %123 = vst [vmem:[%s498_s11 + $0x18] sm:$0xff] %v240_v0  ;;  %p162_p6 = scmp.lt.s32.totalorder (%p606_p5), %s161_s18, 32 }
  0x38   : > { %124 = vst [vmem:[%s498_s11 + $0x20] sm:$0xff] %v240_v0  ;;  %125 = vst [vmem:[%s498_s11 + $0x28] sm:$0xff] %v240_v0 }
  0x39   : > { %126 = vst [vmem:[%s498_s11 + $0x30] sm:$0xff] %v240_v0  ;;  %127 = vst [vmem:[%s498_s11 + $0x38] sm:$0xff] %v240_v0 }
  0x3a   : > { %128 = vst [vmem:[%s498_s11 + $0x40] sm:$0xff] %v240_v0  ;;  %129 = vst [vmem:[%s498_s11 + $0x48] sm:$0xff] %v240_v0 }
  0x3b   : > { %130 = vst [vmem:[%s498_s11 + $0x50] sm:$0xff] %v240_v0  ;;  %131 = vst [vmem:[%s498_s11 + $0x58] sm:$0xff] %v240_v0 }
  0x3c   : > { %132 = vst [vmem:[%s498_s11 + $0x60] sm:$0xff] %v240_v0  ;;  %133 = vst [vmem:[%s498_s11 + $0x68] sm:$0xff] %v240_v0 }
  0x3d   : > { %134 = vst [vmem:[%s498_s11 + $0x70] sm:$0xff] %v240_v0  ;;  %135 = vst [vmem:[%s498_s11 + $0x78] sm:$0xff] %v240_v0 }
  0x3e   : > { %136 = vst [vmem:[%s498_s11 + $0x80] sm:$0xff] %v240_v0  ;;  %137 = vst [vmem:[%s498_s11 + $0x88] sm:$0xff] %v240_v0 }
  0x3f   : > { %138 = vst [vmem:[%s498_s11 + $0x90] sm:$0xff] %v240_v0  ;;  %139 = vst [vmem:[%s498_s11 + $0x98] sm:$0xff] %v240_v0  ;;  %159 = sbr.rel (!%p606_p5) target bundleno = 98 (0x62), region = 32 }
  0x40   : > { %140 = vst [vmem:[%s498_s11 + $0xa0] sm:$0xff] %v240_v0  ;;  %141 = vst [vmem:[%s498_s11 + $0xa8] sm:$0xff] %v240_v0 }
  0x41   : > { %142 = vst [vmem:[%s498_s11 + $0xb0] sm:$0xff] %v240_v0  ;;  %143 = vst [vmem:[%s498_s11 + $0xb8] sm:$0xff] %v240_v0 }
  0x42   : > { %144 = vst [vmem:[%s498_s11 + $0xc0] sm:$0xff] %v240_v0  ;;  %145 = vst [vmem:[%s498_s11 + $0xc8] sm:$0xff] %v240_v0 }
  0x43   : > { %146 = vst [vmem:[%s498_s11 + $0xd0] sm:$0xff] %v240_v0  ;;  %147 = vst [vmem:[%s498_s11 + $0xd8] sm:$0xff] %v240_v0 }
  0x44   : > { %148 = vst [vmem:[%s498_s11 + $0xe0] sm:$0xff] %v240_v0  ;;  %149 = vst [vmem:[%s498_s11 + $0xe8] sm:$0xff] %v240_v0 }
  0x45   : > { %150 = vst [vmem:[%s498_s11 + $0xf0] sm:$0xff] %v240_v0  ;;  %151 = vst [vmem:[%s498_s11 + $0xf8] sm:$0xff] %v240_v0 }
  0x46   : > { %s613_s18 = smov (!%p162_p6, %s161_s18), 32 }
  0x47   : > { %s539_s19 = sshll.u32 %s613_s18, 7 }
  0x48   : > { %s166_s20 = ssub.s32 4096, %s539_s19 }
  0x49   : > { %167 = vsyncadd %s534_s13, %s166_s20  ;;  %p244_p9 = scmp.ne.s32.totalorder %s539_s19, 0  ;;  %s250_s21 = sshll.u32 %s433_s10, 12 }
  0x4a   : > { %s548_s23 = scalar_lea.hbm %s596_s1, %s250_s21  ;;  %s172_s24 = sshll.u32 %s498_s11, 4  ;;  %s551_s24 = int_to_ptr.vmem [resolvable:$true] %s172_s24 }
  0x4b   : > { %s330_s25 = scalar_lea.vmem %s551_s24, %s539_s19  ;;  %s399_s26 = smov [#allocation5]  }
  0x4c   : > { %p331_p10 = scmp.ne.s32.totalorder %s551_s24, %s330_s25  ;;  %s334_s27 = sshll.u32 %s399_s26, 4  ;;  %s335_s27 = int_to_ptr.vmem [resolvable:$false] %s334_s27 }
  0x4d   : > { %s336_s10 = scalar_lea.vmem %s335_s27, 8192  ;;  %p337_p3 = scmp.lt.s32.totalorder %s551_s24, %s335_s27 }
  0x4e   : > { %p332_p12 = pnand %p331_p10, %p244_p9  ;;  %p338_p4 = scmp.lt.s32.totalorder %s336_s10, %s330_s25 }
  0x50   : > { %p333_p2 = pneg %p332_p12  ;;  %p339_p7 = por %p338_p4, %p337_p3 }
  0x52   : > { %p340_p8 = pnand %p339_p7, %p333_p2 }
  0x54   : > { %343 = shalt.err (!%p340_p8)
}
  0x55   : > { %s344_s28 = scalar_lea.hbm %s548_s23, %s539_s19  ;;  %s348_s2 = scalar_lea.hbm %s596_s1, 5376 }
  0x56   : > { %p345_p11 = scmp.ne.s32.totalorder %s548_s23, %s344_s28  ;;  %p349_p0 = scmp.lt.u32.totalorder %s548_s23, %s596_s1 }
  0x57   : > { %p350_p5 = scmp.lt.u32.totalorder %s348_s2, %s344_s28  ;;  %p352_p10 = scmp.lt.u32.totalorder %s344_s28, %s548_s23 }
  0x58   : > { %p346_p13 = pnand %p345_p11, %p244_p9 }
  0x59   : > { %p351_p6 = por %p350_p5, %p349_p0 }
  0x5a   : > { %p347_p1 = pneg %p346_p13 }
  0x5b   : > { %p353_p12 = por %p352_p10, %p351_p6 }
  0x5d   : > { %p354_p2 = pnand %p353_p12, %p347_p1 }
  0x5f   : > { %357 = shalt.err (!%p354_p2)
}
  0x60   : > { %s400_s5 = smov 128   ;;  %s401_s11 = smov 8  }
  0x61   : > { %178 = dma.vmem_to_hbm [thread:$0]  (%p244_p9), %s551_s24, %s539_s19, %s548_s23, %s534_s13, %s400_s5, %s400_s5, %s401_s11  }
  0x62 PF: > { %p266_p3 = scmp.ge.s32.totalorder %s396_s9, 2  ;;  %s187_s14 = sand.u32 1, %s384_s6  }
  0x63   : > { %p607_p4 = scmp.ne.s32.totalorder %s600_s17, 0  ;;  %s188_s18 = scalar_lea.sflag [#allocation4], %s187_s14 }
  0x65   : > { %p261_p7 = pnand %p266_p3, %p607_p4 }
  0x67   : > { %379 = dma.done.wait (!%p261_p7), %s188_s18, 4096  }
  0x68   : > { %381 = vsyncadd (!%p261_p7), %s188_s18, 4294963200  ;;  %p12_p8 = scmp.ge.s32.totalorder %s437_s12, 4   ;;  %s608_s6 = smov %s388_s7 }
  0x69   : > { %s609_s7 = smov %s392_s8  ;;  %s610_s8 = smov %s448_s15 }
  0x6a   : > { %s611_s9 = smov %s437_s12  ;;  %14 = sbr.rel (!%p12_p8) target bundleno = 4 (0x4), region = 61 }
  0x71   :  { %193 = vsyncpa [#allocation3], 1 }
  0x72   :  { %195 = vsyncpa [#allocation3 + $0x1], 1 }
  0x73   :  { %196 = vsyncpa [#allocation4], 1 }
  0x74   :  { %198 = vsyncpa [#allocation4 + $0x1], 1 }

</bundles_post_ra>
